<compile_context>
chip_gen: v5e
topology: v5e:2x2
jax: 0.10.0
libtpu: 0.0.40
codegen_flags: <defaults>
</compile_context>

<pallas_src>
import functools
import math

import jax
import jax.numpy as jnp
from jax.experimental import pallas as pl
from jax.experimental.pallas import tpu as pltpu


_NEG_BIG = -1e10   # matches PyTorch masked_fill(mask == 0, -1e10)


def attention_kernel(hidden_ref, enc_ref, maskb_ref,
                     w_hid_t_ref, w_enc_t_ref, b_ref, v_ref, out_ref,
                     *, energy_dtype):
    """One batch tile, full src_len.

    hidden_ref : [tB, D]       f32
    enc_ref    : [S, tB, E2]   f32/bf16   (native [S, B, E2] layout slab)
    maskb_ref  : [tB, S_pad]   f32/bf16   additive mask bias (0 or -1e10)
    w_hid_t_ref: [D, D]        f32        (W_hid.T : `hidden` columns of attn.weight)
    w_enc_t_ref: [E2, D]       enc dtype  (W_enc.T : encoder columns of attn.weight)
    b_ref      : [1, D]        f32        (attn.bias)
    v_ref      : [1, D]        f32        (v.weight)
    out_ref    : [tB, S_pad]   f32        (softmax attention weights)
    """
    S, tB, E2 = enc_ref.shape
    D = hidden_ref.shape[1]
    S_pad = out_ref.shape[1]

    # ---- src_len-invariant work: hidden projection + bias, once per tile ----
    hb = jnp.dot(hidden_ref[...], w_hid_t_ref[...],
                 preferred_element_type=jnp.float32) + b_ref[...]           # [tB, D]

    # ---- encoder projection (dominant matmul), f32 accumulation on the MXU ----
    # tB is sublane-aligned for enc's dtype, so this reshape is a pure relabel.
    e2d = enc_ref[...].reshape(S * tB, E2)                                   # [S*tB, E2]
    e_part = jnp.dot(e2d, w_enc_t_ref[...],
                     preferred_element_type=jnp.float32)                     # [S*tB, D] f32

    # ---- energy = tanh(.): run the transcendental in bf16 where the EUP
    #      supports it (v6e/v7x); accumulation/adds stay f32 ----
    pre = e_part.reshape(S, tB, D) + hb[None, :, :]                          # [S, tB, D]
    energy = jnp.tanh(pre.astype(energy_dtype)).astype(jnp.float32)

    # ---- v projection: multiply-reduce over D, then the small (S,tB)->(tB,S)
    #      logits transpose (XLU; E2x smaller than the enc stream) ----
    att = jnp.sum(energy * v_ref[...][None, :, :], axis=-1)                  # [S, tB]
    att = att.T                                                              # [tB, S]

    # ---- pad logits to the lane-dense S_pad width (static branch); masked and
    #      padded columns get -1e10 from the additive bias ----
    if S_pad > S:
        att = jnp.concatenate(
            [att, jnp.zeros((tB, S_pad - S), jnp.float32)], axis=1)          # [tB, S_pad]
    att = att + maskb_ref[...].astype(jnp.float32)

    # ---- numerically stable softmax over src_len (single pass) ----
    m = jnp.max(att, axis=-1, keepdims=True)
    ex = jnp.exp(att - m)
    denom = jnp.sum(ex, axis=-1, keepdims=True)
    inv = pl.reciprocal(denom, approx=True)       # EUP slot (divide off the VALU)
    inv = inv * (2.0 - denom * inv)               # one Newton step -> ~f32-exact
    out_ref[...] = ex * inv


def _round_up(x, m):
    return (x + m - 1) // m * m


def _device_kind():
    try:
        return jax.devices()[0].device_kind.lower()
    except Exception:
        return ""


def _vmem_limit_bytes(kind):
    """Per-generation scoped-VMEM limit.

    v5e/v6e have 128 MiB physical VMEM -> allow 64 MiB; v7x has 64 MiB per
    TensorCore -> stay at 40 MiB; unknown/older chips: conservative 32 MiB.
    """
    if "v7" in kind:
        return 40 * 1024 * 1024
    if "v6" in kind or "v5 lite" in kind or "v5e" in kind or "v5lite" in kind:
        return 64 * 1024 * 1024
    return 32 * 1024 * 1024


def _live_vmem_bytes(t, S, S_pad, E2, D, enc_isz, mask_isz):
    """Estimated per-grid-step live VMEM for batch tile t.

    Counts the double-buffered input/output tiles AND the f32 intermediates
    (e_part/energy), which are ~2x the bf16 enc tile each.
    """
    enc_tile = S * t * E2 * enc_isz
    mask_tile = t * S_pad * mask_isz
    out_tile = t * S_pad * 4
    hid_tile = t * D * 4
    weights = D * D * 4 + E2 * D * enc_isz + 2 * D * 4
    f32_inter = 2 * S * t * D * 4              # e_part + energy
    logits = 3 * t * S_pad * 4                 # att / exp / softmax temporaries
    return (2 * (enc_tile + mask_tile + out_tile + hid_tile + weights)
            + f32_inter + logits)


def _pick_batch_tile(B_pad, S, S_pad, E2, D, enc_isz, mask_isz, sublane,
                     vmem_limit, min_steps):
    """Largest multiple-of-`sublane` divisor of B_pad that (a) fits the VMEM
    budget with all intermediates counted and (b) leaves >= min_steps grid
    steps so the BlockSpec pipeline can actually overlap DMA with compute."""
    budget = vmem_limit // 2      # headroom for compiler scratch / estimate slack
    fits = [t for t in range(sublane, B_pad + 1, sublane)
            if B_pad % t == 0
            and _live_vmem_bytes(t, S, S_pad, E2, D, enc_isz, mask_isz) <= budget]
    if not fits:
        # Pathological (huge S*E2): smallest legal tile.
        # TODO(synk): S-tiled online-softmax path would remove this cliff.
        return sublane
    pipelined = [t for t in fits if B_pad // t >= min_steps]
    if pipelined:                 # biggest tile that still fills the pipeline
        return max(pipelined)
    two_step = [t for t in fits if B_pad // t >= 2]
    return max(two_step) if two_step else max(fits)


def attention_forward(hidden, encoder_outputs, mask, w_hid, w_enc, bias, v, *,
                      enc_compute_dtype=jnp.bfloat16, batch_tile=None):
    """hidden:[B,D], encoder_outputs:[S,B,E2] (torch layout), mask:[B,S] -> [B,S] softmax."""
    S, B, E2 = encoder_outputs.shape
    D = hidden.shape[1]
    kind = _device_kind()

    # HBM-bound kernel: bf16 halves the bytes of the dominant enc stream while
    # the MXU still accumulates in f32.  Pass enc_compute_dtype=jnp.float32 to opt out.
    enc = encoder_outputs
    if enc_compute_dtype is not None and enc.dtype != enc_compute_dtype:
        enc = enc.astype(enc_compute_dtype)
    enc_isz = jnp.dtype(enc.dtype).itemsize

    # tanh in bf16 only on chips with a bf16 EUP/VPU (v6e/v7x); f32 on v5e/older.
    energy_dtype = (jnp.bfloat16
                    if (enc_isz == 2 and ("v6" in kind or "v7" in kind))
                    else jnp.float32)

    # Sublane tile for enc's dtype (f32 -> 8, bf16 -> 16): keeps every BlockSpec
    # (sublane,128)-legal and the in-kernel reshapes pure relabels.
    sublane = 8 * (4 // enc_isz)

    # Lane-dense softmax/output: pad src_len to a multiple of 128 on the
    # logits/mask/output side only (enc stream is NOT padded along S).
    S_pad = _round_up(S, 128)

    B_pad = _round_up(B, sublane)
    hidden_p = hidden.astype(jnp.float32)
    if B_pad != B:
        enc = jnp.pad(enc, ((0, 0), (0, B_pad - B), (0, 0)))
        hidden_p = jnp.pad(hidden_p, ((0, B_pad - B), (0, 0)))

    # Additive mask bias replaces the int32 mask stream: 0 where valid, -1e10
    # where masked or in padded rows/columns.  bf16 on the bf16 path halves its bytes.
    mask_dtype = jnp.bfloat16 if enc_isz == 2 else jnp.float32
    maskb = jnp.where(mask == 0, jnp.float32(_NEG_BIG), jnp.float32(0.0))
    maskb = jnp.pad(maskb, ((0, B_pad - B), (0, S_pad - S)),
                    constant_values=_NEG_BIG).astype(mask_dtype)
    mask_isz = jnp.dtype(mask_dtype).itemsize

    vmem_limit = _vmem_limit_bytes(kind)
    # On v7x the "parallel" batch axis is split across 2 TensorCores; each core
    # needs >= 4 grid steps for the DMA pipeline to fill.
    min_steps = 8 if "v7" in kind else 4
    if batch_tile is None:
        batch_tile = _pick_batch_tile(B_pad, S, S_pad, E2, D, enc_isz, mask_isz,
                                      sublane, vmem_limit, min_steps)
    assert batch_tile % sublane == 0 and B_pad % batch_tile == 0, \
        (batch_tile, B_pad, sublane)
    nb = B_pad // batch_tile

    # Linear(cat(hidden, enc)) == hidden @ W_hid.T + enc @ W_enc.T + b
    w_hid_t = w_hid.T.astype(jnp.float32)          # [D, D]
    w_enc_t = w_enc.T.astype(enc.dtype)            # [E2, D], matches enc dtype for the MXU
    b2 = bias.reshape(1, D).astype(jnp.float32)
    v2 = v.reshape(1, D).astype(jnp.float32)

    kernel = functools.partial(attention_kernel, energy_dtype=energy_dtype)

    out = pl.pallas_call(
        kernel,
        out_shape=jax.ShapeDtypeStruct((B_pad, S_pad), jnp.float32),
        grid=(nb,),
        in_specs=[
            pl.BlockSpec((batch_tile, D), lambda i: (i, 0)),          # hidden
            # TODO(synk): pipeline_mode=pl.Buffered(3) here if enc DMA is still
            # exposed on v7x after the tile/grid sizing above.
            pl.BlockSpec((S, batch_tile, E2), lambda i: (0, i, 0)),   # enc, native [S,B,E2]
            pl.BlockSpec((batch_tile, S_pad), lambda i: (i, 0)),      # additive mask bias
            pl.BlockSpec((D, D), lambda i: (0, 0)),                   # W_hid.T  (resident)
            pl.BlockSpec((E2, D), lambda i: (0, 0)),                  # W_enc.T  (resident)
            pl.BlockSpec((1, D), lambda i: (0, 0)),                   # bias
            pl.BlockSpec((1, D), lambda i: (0, 0)),                   # v
        ],
        out_specs=pl.BlockSpec((batch_tile, S_pad), lambda i: (i, 0)),
        compiler_params=pltpu.CompilerParams(
            dimension_semantics=("parallel",),       # batch tiles are independent
            vmem_limit_bytes=vmem_limit,             # per-generation limit (see above)
        ),
    )(hidden_p, enc, maskb, w_hid_t, w_enc_t, b2, v2)

    return out[:B, :S]


def attention_ref(hidden, encoder_outputs, mask, W, b, v):
    """Pure-JAX f32 mirror of the PyTorch forward (for verification)."""
    S = encoder_outputs.shape[0]
    hid_rep = jnp.repeat(hidden[:, None, :], S, axis=1)          # [B, S, D]
    enc = jnp.transpose(encoder_outputs, (1, 0, 2))              # [B, S, E2]
    cat = jnp.concatenate([hid_rep, enc], axis=2)                # [B, S, D+E2]
    energy = jnp.tanh(cat @ W.T + b)                             # [B, S, D]
    att = (energy @ v.T)[:, :, 0]                                # [B, S]
    att = jnp.where(mask == 0, _NEG_BIG, att)
    return jax.nn.softmax(att, axis=1)


if __name__ == "__main__":
    enc_hid_dim = 16
    dec_hid_dim = 32
    E2 = enc_hid_dim * 2      # 32
    D = dec_hid_dim           # 32

    key = jax.random.PRNGKey(0)
    k1, k2, k3, k4, k5, k6 = jax.random.split(key, 6)

    # PyTorch Linear shapes:
    #   attn.weight: [D, D + E2]  (first D columns hit `hidden`, last E2 hit encoder outputs)
    #   attn.bias:   [D];   v.weight: [1, D]
    bound_attn = 1.0 / math.sqrt(D + E2)
    bound_v = 1.0 / math.sqrt(D)
    w_hid = jax.random.uniform(k1, (D, D), jnp.float32, -bound_attn, bound_attn)
    w_enc = jax.random.uniform(k2, (D, E2), jnp.float32, -bound_attn, bound_attn)
    bias = jax.random.uniform(k3, (D,), jnp.float32, -bound_attn, bound_attn)
    v = jax.random.uniform(k4, (1, D), jnp.float32, -bound_v, bound_v)
    W_full = jnp.concatenate([w_hid, w_enc], axis=1)   # torch cat order: (hidden, enc)

    def run_case(batch, src_len, kb, enc_dtype, atol):
        kh, ke, km = jax.random.split(kb, 3)
        hidden = jax.random.normal(kh, (batch, D), jnp.float32)
        encoder_outputs = jax.random.normal(ke, (src_len, batch, E2), jnp.float32)
        mask = (jax.random.uniform(km, (batch, src_len)) > 0.3).astype(jnp.int32)
        mask = mask.at[:, 0].set(1)     # guarantee >=1 valid position per row

        out = attention_forward(hidden, encoder_outputs, mask, w_hid, w_enc, bias, v,
                                enc_compute_dtype=enc_dtype)
        out = jax.block_until_ready(out)

        ref = attention_ref(hidden, encoder_outputs, mask, W_full, bias, v)
        assert out.shape == (batch, src_len)
        assert bool(jnp.all(jnp.isfinite(out)))
        assert bool(jnp.allclose(jnp.sum(out, axis=1), 1.0, atol=1e-3))
        err = float(jnp.max(jnp.abs(out - ref)))
        assert err < atol, ("mismatch", batch, src_len, str(enc_dtype), err)

    # Case 1: tiny, unaligned batch + short src_len (exercises batch padding and
    # the S -> 128 logits padding + mask folding), f32 path, tight check.
    run_case(batch=2, src_len=8, kb=k5, enc_dtype=jnp.float32, atol=2e-4)

    # Case 2: TPU-friendly shapes on the default bf16 path: batch=128 gives a
    # multi-step pipelined grid (nb >= 4 per core) with lane-dense S=128 output.
    run_case(batch=128, src_len=128, kb=k6, enc_dtype=jnp.bfloat16, atol=5e-2)

    print("KERNEL_OK")
</pallas_src>

<mosaic_0001>
module attributes {stable_mosaic.version = 11 : i64} {
  func.func @attention_kernel(%arg0: i32, %arg1: memref<8x32xf32, #tpu.memory_space<vmem>>, %arg2: memref<8x8x32xf32, #tpu.memory_space<vmem>>, %arg3: memref<8x128xf32, #tpu.memory_space<vmem>>, %arg4: memref<32x32xf32, #tpu.memory_space<vmem>>, %arg5: memref<32x32xf32, #tpu.memory_space<vmem>>, %arg6: memref<1x32xf32, #tpu.memory_space<vmem>>, %arg7: memref<1x32xf32, #tpu.memory_space<vmem>>, %arg8: memref<8x128xf32, #tpu.memory_space<vmem>>) attributes {dimension_semantics = [#tpu.dimension_semantics<parallel>], iteration_bounds = array<i64: 1>, scalar_prefetch = 0 : i64, scratch_operands = 0 : i64, tpu.core_type = #tpu.core_type<tc>, window_params = [{transform_indices = @transform_0, window_bounds = array<i64: 8, 32>}, {transform_indices = @transform_1, window_bounds = array<i64: 8, 8, 32>}, {transform_indices = @transform_2, window_bounds = array<i64: 8, 128>}, {pipeline_mode = #tpu.pipeline_mode<synchronous>, transform_indices = @transform_3, window_bounds = array<i64: 32, 32>}, {pipeline_mode = #tpu.pipeline_mode<synchronous>, transform_indices = @transform_4, window_bounds = array<i64: 32, 32>}, {pipeline_mode = #tpu.pipeline_mode<synchronous>, transform_indices = @transform_5, window_bounds = array<i64: 1, 32>}, {pipeline_mode = #tpu.pipeline_mode<synchronous>, transform_indices = @transform_6, window_bounds = array<i64: 1, 32>}, {transform_indices = @transform_7, window_bounds = array<i64: 8, 128>}]} {
    %c0 = arith.constant 0 : index
    %c0_0 = arith.constant 0 : index
    %0 = vector.load %arg1[%c0, %c0_0] : memref<8x32xf32, #tpu.memory_space<vmem>>, vector<8x32xf32>
    %c0_1 = arith.constant 0 : index
    %c0_2 = arith.constant 0 : index
    %1 = vector.load %arg4[%c0_1, %c0_2] : memref<32x32xf32, #tpu.memory_space<vmem>>, vector<32x32xf32>
    %cst = arith.constant dense<0.000000e+00> : vector<8x32xf32>
    %2 = tpu.matmul %0, %1, %cst {dimension_numbers = #tpu.dot_dimension_numbers<[1], [0], [0], [1], [0, 0, 1, 1], [], []>} : vector<8x32xf32>, vector<32x32xf32>, vector<8x32xf32> -> vector<8x32xf32>
    %c0_3 = arith.constant 0 : index
    %c0_4 = arith.constant 0 : index
    %3 = vector.load %arg6[%c0_3, %c0_4] : memref<1x32xf32, #tpu.memory_space<vmem>>, vector<1x32xf32>
    %4 = vector.broadcast %3 : vector<1x32xf32> to vector<8x32xf32>
    %5 = arith.addf %2, %4 : vector<8x32xf32>
    %c0_5 = arith.constant 0 : index
    %c0_6 = arith.constant 0 : index
    %c0_7 = arith.constant 0 : index
    %6 = vector.load %arg2[%c0_5, %c0_6, %c0_7] : memref<8x8x32xf32, #tpu.memory_space<vmem>>, vector<8x8x32xf32>
    %7 = vector.shape_cast %6 : vector<8x8x32xf32> to vector<64x32xf32>
    %c0_8 = arith.constant 0 : index
    %c0_9 = arith.constant 0 : index
    %8 = vector.load %arg5[%c0_8, %c0_9] : memref<32x32xf32, #tpu.memory_space<vmem>>, vector<32x32xf32>
    %cst_10 = arith.constant dense<0.000000e+00> : vector<64x32xf32>
    %9 = tpu.matmul %7, %8, %cst_10 {dimension_numbers = #tpu.dot_dimension_numbers<[1], [0], [0], [1], [0, 0, 1, 1], [], []>} : vector<64x32xf32>, vector<32x32xf32>, vector<64x32xf32> -> vector<64x32xf32>
    %10 = vector.shape_cast %9 : vector<64x32xf32> to vector<8x8x32xf32>
    %11 = vector.shape_cast %5 : vector<8x32xf32> to vector<1x8x32xf32>
    %12 = vector.broadcast %11 : vector<1x8x32xf32> to vector<8x8x32xf32>
    %13 = arith.addf %10, %12 : vector<8x8x32xf32>
    %14 = math.tanh %13 : vector<8x8x32xf32>
    %c0_11 = arith.constant 0 : index
    %c0_12 = arith.constant 0 : index
    %15 = vector.load %arg7[%c0_11, %c0_12] : memref<1x32xf32, #tpu.memory_space<vmem>>, vector<1x32xf32>
    %16 = vector.shape_cast %15 : vector<1x32xf32> to vector<1x1x32xf32>
    %17 = vector.broadcast %16 : vector<1x1x32xf32> to vector<8x8x32xf32>
    %18 = arith.mulf %14, %17 : vector<8x8x32xf32>
    %cst_13 = arith.constant dense<0.000000e+00> : vector<8x8xf32>
    %19 = vector.multi_reduction <add>, %18, %cst_13 [2] : vector<8x8x32xf32> to vector<8x8xf32>
    %20 = tpu.transpose %19, [1, 0] : vector<8x8xf32> -> vector<8x8xf32>
    %cst_14 = arith.constant 0.000000e+00 : f32
    %21 = vector.broadcast %cst_14 : f32 to vector<8x120xf32>
    %22 = tpu.concatenate %20, %21 in 1 : vector<8x8xf32>, vector<8x120xf32> -> vector<8x128xf32>
    %c0_15 = arith.constant 0 : index
    %c0_16 = arith.constant 0 : index
    %23 = vector.load %arg3[%c0_15, %c0_16] : memref<8x128xf32, #tpu.memory_space<vmem>>, vector<8x128xf32>
    %24 = arith.addf %22, %23 : vector<8x128xf32>
    %cst_17 = arith.constant dense<0xFF800000> : vector<8xf32>
    %25 = vector.multi_reduction <maximumf>, %24, %cst_17 [1] : vector<8x128xf32> to vector<8xf32>
    %26 = vector.shape_cast %25 : vector<8xf32> to vector<8x1xf32>
    %27 = vector.broadcast %26 : vector<8x1xf32> to vector<8x128xf32>
    %28 = arith.subf %24, %27 : vector<8x128xf32>
    %29 = math.exp %28 : vector<8x128xf32>
    %cst_18 = arith.constant dense<0.000000e+00> : vector<8xf32>
    %30 = vector.multi_reduction <add>, %29, %cst_18 [1] : vector<8x128xf32> to vector<8xf32>
    %31 = vector.shape_cast %30 : vector<8xf32> to vector<8x1xf32>
    %32 = tpu.reciprocal %31 {approx = true} : vector<8x1xf32> -> vector<8x1xf32>
    %33 = arith.mulf %31, %32 : vector<8x1xf32>
    %cst_19 = arith.constant 2.000000e+00 : f32
    %34 = vector.broadcast %cst_19 : f32 to vector<8x1xf32>
    %35 = arith.subf %34, %33 : vector<8x1xf32>
    %36 = arith.mulf %32, %35 : vector<8x1xf32>
    %37 = vector.broadcast %36 : vector<8x1xf32> to vector<8x128xf32>
    %38 = arith.mulf %29, %37 : vector<8x128xf32>
    %c0_20 = arith.constant 0 : index
    %c0_21 = arith.constant 0 : index
    %39 = vector.load %arg8[%c0_20, %c0_21] : memref<8x128xf32, #tpu.memory_space<vmem>>, vector<8x128xf32>
    tpu.vector_store %arg8[%c0_20, %c0_21], %38 {strides = array<i32>} : memref<8x128xf32, #tpu.memory_space<vmem>>, vector<8x128xf32>,
    return
  }
  func.func @transform_0(%arg0: i32) -> (i32, i32) {
    %c0_i32 = arith.constant 0 : i32
    %c0_i32_0 = arith.constant 0 : i32
    return %arg0, %c0_i32 : i32, i32
  }
  func.func @transform_1(%arg0: i32) -> (i32, i32, i32) {
    %c0_i32 = arith.constant 0 : i32
    %c0_i32_0 = arith.constant 0 : i32
    %c0_i32_1 = arith.constant 0 : i32
    return %c0_i32, %arg0, %c0_i32_0 : i32, i32, i32
  }
  func.func @transform_2(%arg0: i32) -> (i32, i32) {
    %c0_i32 = arith.constant 0 : i32
    %c0_i32_0 = arith.constant 0 : i32
    return %arg0, %c0_i32 : i32, i32
  }
  func.func @transform_3(%arg0: i32) -> (i32, i32) {
    %c0_i32 = arith.constant 0 : i32
    %c0_i32_0 = arith.constant 0 : i32
    %c0_i32_1 = arith.constant 0 : i32
    return %c0_i32, %c0_i32_0 : i32, i32
  }
  func.func @transform_4(%arg0: i32) -> (i32, i32) {
    %c0_i32 = arith.constant 0 : i32
    %c0_i32_0 = arith.constant 0 : i32
    %c0_i32_1 = arith.constant 0 : i32
    return %c0_i32, %c0_i32_0 : i32, i32
  }
  func.func @transform_5(%arg0: i32) -> (i32, i32) {
    %c0_i32 = arith.constant 0 : i32
    %c0_i32_0 = arith.constant 0 : i32
    %c0_i32_1 = arith.constant 0 : i32
    return %c0_i32, %c0_i32_0 : i32, i32
  }
  func.func @transform_6(%arg0: i32) -> (i32, i32) {
    %c0_i32 = arith.constant 0 : i32
    %c0_i32_0 = arith.constant 0 : i32
    %c0_i32_1 = arith.constant 0 : i32
    return %c0_i32, %c0_i32_0 : i32, i32
  }
  func.func @transform_7(%arg0: i32) -> (i32, i32) {
    %c0_i32 = arith.constant 0 : i32
    %c0_i32_0 = arith.constant 0 : i32
    return %arg0, %c0_i32 : i32, i32
  }
}

</mosaic_0001>

<bundles_post_ra>
// kernel: tpu_custom_call.1
= control target key start
LH: loop header
LB: loop body
LE: loop exit
PB: predicated region body
PF: predicated region fallthrough
CT: control target
= control target key end

     0   :  { %12 = vsyncpa [#allocation3], 0  ;;  %s653_s0 = inlined_call_operand.hbm [shape: f32[8,32], index: 0, kind: input, shape index: {}]   ;;  %s654_s1 = inlined_call_operand.hbm [shape: f32[8,8,32], index: 1, kind: input, shape index: {}]   ;;  %s655_s2 = inlined_call_operand.hbm [shape: f32[8,128], index: 2, kind: input, shape index: {}]   ;;  %s656_s3 = inlined_call_operand.hbm [shape: f32[32,32], index: 3, kind: input, shape index: {}]   ;;  %s657_s4 = inlined_call_operand.hbm [shape: f32[32,32], index: 4, kind: input, shape index: {}]   ;;  %s658_s5 = inlined_call_operand.vmem [shape: f32[1,32], index: 5, kind: input, shape index: {}]   ;;  %s659_s6 = inlined_call_operand.vmem [shape: f32[1,32], index: 6, kind: input, shape index: {}]   ;;  %s660_s7 = inlined_call_operand.hbm [shape: f32[8,128], index: 7, kind: output, shape index: {}]  }
   0x1   :  { %13 = vsyncpa [#allocation6], 0 }
   0x2   :  { %14 = vsyncpa [#allocation9], 0  ;;  %s31_s26 = sshll.u32 %s654_s1, 4  ;;  %s32_s26 = int_to_ptr.hbm [resolvable:$true] %s31_s26 }
   0x3   :  { %15 = vsyncpa [#allocation4], 0  ;;  %s564_s27 = smov [#allocation5]   ;;  %s55_s8 = sshll.u32 %s656_s3, 4  ;;  %s56_s8 = int_to_ptr.hbm [resolvable:$true] %s55_s8 }
   0x4   :  { %s33_s28 = sshll.u32 %s564_s27, 4  ;;  %s565_s9 = smov 128   ;;  %s34_s28 = int_to_ptr.vmem [resolvable:$true] %s33_s28 }
   0x5   :  { %s566_s10 = smov 8   ;;  %s567_s11 = smov [#allocation8]  }
   0x6   :  { %39 = dma.hbm_to_vmem [thread:$0]  %s32_s26, 1024, %s34_s28, [#allocation6], %s565_s9, %s565_s9, %s566_s10  }
   0x7   :  { %s57_s12 = sshll.u32 %s567_s11, 4  ;;  %s21_s15 = sshll.u32 %s653_s0, 4  ;;  %s58_s12 = int_to_ptr.vmem [resolvable:$true] %s57_s12  ;;  %s22_s15 = int_to_ptr.hbm [resolvable:$true] %s21_s15 }
   0x8   :  { %63 = dma.hbm_to_vmem [thread:$0]  %s56_s8, 512, %s58_s12, [#allocation9], %s565_s9, %s565_s9, %s566_s10  }
   0x9   :  { %s45_s17 = sshll.u32 %s655_s2, 4  ;;  %s568_s18 = smov [#allocation2]   ;;  %s46_s17 = int_to_ptr.hbm [resolvable:$true] %s45_s17 }
   0xa   :  { %s23_s19 = sshll.u32 %s568_s18, 4  ;;  %s569_s3 = smov [#allocation7]   ;;  %s24_s19 = int_to_ptr.vmem [resolvable:$true] %s23_s19 }
   0xb   :  { %26 = dma.hbm_to_vmem [thread:$0]  %s22_s15, 128, %s24_s19, [#allocation3]  }
   0xc   :  { %s47_s20 = sshll.u32 %s569_s3, 4  ;;  %s68_s23 = sshll.u32 %s657_s4, 4  ;;  %s48_s20 = int_to_ptr.vmem [resolvable:$true] %s47_s20  ;;  %s69_s23 = int_to_ptr.hbm [resolvable:$true] %s68_s23 }
   0xd   :  { %50 = dma.hbm_to_vmem [thread:$0]  %s46_s17, 128, %s48_s20, [#allocation6]  }
   0xe   :  { %s570_s0 = smov [#allocation10]  }
   0xf   :  { %s70_s24 = sshll.u32 %s570_s0, 4  ;;  %s71_s24 = int_to_ptr.vmem [resolvable:$true] %s70_s24 }
  0x10   :  { %76 = dma.hbm_to_vmem [thread:$0]  %s69_s23, 512, %s71_s24, [#allocation9], %s565_s9, %s565_s9, %s566_s10  }
  0x11   :  { %556 = dma.done.wait [#allocation3], 128  }
  0x12   :  { %557 = vsyncadd [#allocation3], 4294967168 }
  0x13   :  { %558 = dma.done.wait [#allocation6], 1152  }
  0x14   :  { %559 = vsyncadd [#allocation6], 4294966144 }
  0x15   :  { %560 = dma.done.wait [#allocation9], 1024  }
  0x16   :  { %561 = vsyncadd [#allocation9], 4294966272  ;;  %v105_v0 = vld [vmem:[#allocation8 + $0x18] sm:$0xff]  ;;  %v104_v2 = vld [vmem:[#allocation8 + $0x10] sm:$0xff]  ;;  %vm110_vm0 = vcmask 261120   ;;  %v271_v63 = vlaneseq  ;;  %vm281_vm1 = vcmask 1041409  }
  0x17   :  { %v145_v1 = vld [vmem:[#allocation10 + $0x18] sm:$0xff]  ;;  %126 = vmatpush.msra.mxu0 %v105_v0  ;;  %v144_v3 = vld [vmem:[#allocation10 + $0x10] sm:$0xff]  ;;  %v103_v4 = vld [vmem:[#allocation8 + $0x8] sm:$0xff]  ;;  %vm283_vm2 = vcmask 1042434   ;;  %vm285_vm3 = vcmask 1043459   ;;  %vm287_vm4 = vcmask 1044484  }
  0x18   :  { %373 = vmatpush.msra.mxu2 %v145_v1  ;;  %374 = vmatpush.msra.mxu3 %v145_v1  ;;  %v143_v5 = vld [vmem:[#allocation10 + $0x8] sm:$0xff]  ;;  %v102_v6 = vld [vmem:[#allocation8] sm:$0xff]  ;;  %v101_v8 = vld [vmem:[#allocation2] sm:$0xff]  ;;  %vm289_vm5 = vcmask 1045509   ;;  %vm291_vm6 = vcmask 1046534   ;;  %vm293_vm7 = vcmask 1047559  }
  0x19   :  { %182 = vmatpush.msra.mxu1 %v145_v1  ;;  %127 = vmatpush.msra.mxu0 %v104_v2  ;;  %v142_v7 = vld [vmem:[#allocation10] sm:$0xff]  ;;  %v136_v9 = vld [vmem:[#allocation5 + $0x10] sm:$0xff]  ;;  %v134_v11 = vld [vmem:[#allocation5] sm:$0xff]  ;;  %v272_v2 = vand.u32 127, %v271_v63  ;;  %vm328_vm8 = vcmask 64512   ;;  %s352_s29 = sshll.u32 %s660_s7, 4  ;;  %s353_s29 = int_to_ptr.hbm [resolvable:$true] %s352_s29 }
  0x1a   :  { %375 = vmatpush.msra.mxu2 %v144_v3  ;;  %376 = vmatpush.msra.mxu3 %v144_v3  ;;  %v139_v10 = vld [vmem:[#allocation5 + $0x28] sm:$0xff]  ;;  %v137_v12 = vld [vmem:[#allocation5 + $0x18] sm:$0xff]  ;;  %v140_v13 = vld [vmem:[#allocation5 + $0x30] sm:$0xff] }
  0x1b   :  { %183 = vmatpush.msra.mxu1 %v144_v3  ;;  %128 = vmatpush.msra.mxu0 %v103_v4  ;;  %v135_v14 = vld [vmem:[#allocation5 + $0x8] sm:$0xff]  ;;  %v138_v15 = vld [vmem:[#allocation5 + $0x20] sm:$0xff]  ;;  %v141_v16 = vld [vmem:[#allocation5 + $0x38] sm:$0xff] }
  0x1c   :  { %377 = vmatpush.msra.mxu2 %v143_v5  ;;  %378 = vmatpush.msra.mxu3 %v143_v5  ;;  %v390_v17 = vld [vmem:[%s658_s5] ss:$0 sm:$0xff]  ;;  %s571_s5 = smov [#allocation11]  }
  0x1d   :  { %184 = vmatpush.msra.mxu1 %v143_v5  ;;  %129 = vmatpush.msra.mxu0 %v102_v6  ;;  %v391_v25 = vld [vmem:[%s659_s6] ss:$0 sm:$0xff]  ;;  %s350_s6 = sshll.u32 %s571_s5, 4  ;;  %s351_s6 = int_to_ptr.vmem [resolvable:$true] %s350_s6 }
  0x1e   :  { %379 = vmatpush.msra.mxu2 %v142_v7  ;;  %380 = vmatpush.msra.mxu3 %v142_v7 }
  0x1f   :  { %364 = vmatmul.msk.f32.vlgmr.msra.gmra.mxu0 %vm110_vm0, %v101_v8  ;;  %367 = vmatmul.msk.f32.vlgmr.msra.gmra.mxu2 %vm110_vm0, %v136_v9 }
  0x20   :  { %370 = vmatmul.msk.f32.vlgmr.msra.gmra.mxu3 %vm110_vm0, %v139_v10  ;;  %185 = vmatpush.msra.mxu1 %v142_v7 }
  0x21   :  { %365 = vmatmul.msk.f32.vlgmr.msra.gmra.mxu1 %vm110_vm0, %v134_v11 }
  0x27   :  { %368 = vmatmul.msk.f32.gmra.mxu2 %vm110_vm0, %v137_v12 }
  0x28   :  { %371 = vmatmul.msk.f32.gmra.mxu3 %vm110_vm0, %v140_v13 }
  0x29   :  { %366 = vmatmul.msk.f32.gmra.mxu1 %vm110_vm0, %v135_v14 }
  0x2f   :  { %369 = vmatmul.msk.f32.gmra.mxu2 %vm110_vm0, %v138_v15 }
  0x30   :  { %372 = vmatmul.msk.f32.gmra.mxu3 %vm110_vm0, %v141_v16 }
  0x9c   :  { %v131_v18 = vpop.f32.mrf.mxu0 }
  0x9d   :  { %v132_v19 = vadd.f32 %v390_v17, %v131_v18 }
  0x9e   :  { %v187_v20 = vpop.f32.mrf.mxu1 }
  0x9f   :  { %v211_v21 = vadd.f32 %v187_v20, %v132_v19 }
  0xa1   :  { %392 = vtanh.f32 %v211_v21 }
  0xa2   :  { %v193_v22 = vpop.f32.mrf.mxu2 }
  0xa3   :  { %v202_v23 = vpop.f32.mrf.mxu3  ;;  %v213_v24 = vadd.f32 %v193_v22, %v132_v19  ;;  %v330_v22 = vld [vmem:[#allocation7] sm:$0xff] }
  0xa4   :  { %v216_v48 = vadd.f32 %v202_v23, %v132_v19 }
  0xa5   :  { %394 = vtanh.f32 %v213_v24 }
  0xa6   :  { %v190_v26 = vpop.f32.mrf.mxu1 }
  0xa7   :  { %v393_v27 = vpop.eup %392  ;;  %v212_v28 = vadd.f32 %v190_v26, %v132_v19 }
  0xa8   :  { %v231_v29 = vmul.f32 %v393_v27, %v391_v25 }
  0xa9   :  { %396 = vtanh.f32 %v212_v28 }
  0xaa   :  { %v196_v30 = vpop.f32.mrf.mxu2  ;;  %v239_v32 = vsel %vm110_vm0, %v231_v29, 0.0 }
  0xab   :  { %v205_v31 = vpop.f32.mrf.mxu3  ;;  %v395_v33 = vpop.eup %394  ;;  %v214_v34 = vadd.f32 %v196_v30, %v132_v19  ;;  %240 = vadd.xlane.f32.xlu0 %v239_v32 }
  0xac   :  { %v217_v35 = vadd.f32 %v205_v31, %v132_v19  ;;  %v233_v36 = vmul.f32 %v395_v33, %v391_v25 }
  0xad   :  { %398 = vtanh.f32 %v214_v34 }
  0xae   :  { %400 = vtanh.f32 %v217_v35  ;;  %v245_v37 = vsel %vm110_vm0, %v233_v36, 0.0 }
  0xaf   :  { %v397_v38 = vpop.eup %396  ;;  %246 = vadd.xlane.f32.xlu1 %v245_v37 }
  0xb0   :  { %v232_v39 = vmul.f32 %v397_v38, %v391_v25 }
  0xb2   :  { %v199_v40 = vpop.f32.mrf.mxu2  ;;  %v242_v42 = vsel %vm110_vm0, %v232_v39, 0.0 }
  0xb3   :  { %v208_v41 = vpop.f32.mrf.mxu3  ;;  %v399_v43 = vpop.eup %398  ;;  %v215_v44 = vadd.f32 %v199_v40, %v132_v19  ;;  %243 = vadd.xlane.f32.xlu0 %v242_v42 }
  0xb4   :  { %v218_v45 = vadd.f32 %v208_v41, %v132_v19  ;;  %v401_v46 = vpop.eup %400  ;;  %v234_v47 = vmul.f32 %v399_v43, %v391_v25 }
  0xb5   :  { %402 = vtanh.f32 %v215_v44  ;;  %v237_v50 = vmul.f32 %v401_v46, %v391_v25 }
  0xb6   :  { %404 = vtanh.f32 %v218_v45  ;;  %v248_v49 = vsel %vm110_vm0, %v234_v47, 0.0 }
  0xb7   :  { %249 = vadd.xlane.f32.xlu1 %v248_v49  ;;  %406 = vtanh.f32 %v216_v48  ;;  %v257_v51 = vsel %vm110_vm0, %v237_v50, 0.0 }
  0xbb   :  { %v403_v52 = vpop.eup %402  ;;  %258 = vadd.xlane.f32.xlu0 %v257_v51 }
  0xbc   :  { %v405_v53 = vpop.eup %404  ;;  %v235_v54 = vmul.f32 %v403_v52, %v391_v25 }
  0xbd   :  { %v238_v55 = vmul.f32 %v405_v53, %v391_v25  ;;  %v407_v57 = vpop.eup %406 }
  0xbe   :  { %v251_v56 = vsel %vm110_vm0, %v235_v54, 0.0  ;;  %v236_v59 = vmul.f32 %v407_v57, %v391_v25 }
  0xbf   :  { %252 = vadd.xlane.f32.xlu2 %v251_v56  ;;  %v260_v58 = vsel %vm110_vm0, %v238_v55, 0.0 }
  0xc0   :  { %261 = vadd.xlane.f32.xlu1 %v260_v58  ;;  %v254_v60 = vsel %vm110_vm0, %v236_v59, 0.0 }
  0xc7   :  { %255 = vadd.xlane.f32.xlu2 %v254_v60 }
 0x11e   :  { %v241_v61 = vpop.xlane.xlu0 %240 }
 0x11f   :  { %v273_v4 = vperm.slane %v241_v61, %v272_v2 }
 0x122   :  { %v247_v62 = vpop.xlane.xlu1 %246 }
 0x123   :  { %v275_v8 = vperm.slane %v247_v62, %v272_v2 }
 0x126   :  { %v244_v0 = vpop.xlane.xlu0 %243 }
 0x127   :  { %v274_v5 = vperm.slane %v244_v0, %v272_v2 }
 0x129   :  { %v282_v6 = vsel %vm281_vm1, %v274_v5, %v273_v4 }
 0x12a   :  { %v250_v1 = vpop.xlane.xlu1 %249  ;;  %v284_v11 = vsel %vm283_vm2, %v275_v8, %v282_v6 }
 0x12b   :  { %v276_v7 = vperm.slane %v250_v1, %v272_v2 }
 0x12d   :  { %v286_v14 = vsel %vm285_vm3, %v276_v7, %v284_v11 }
 0x12e   :  { %v259_v10 = vpop.xlane.xlu0 %258 }
 0x12f   :  { %v279_v16 = vperm.slane %v259_v10, %v272_v2 }
 0x132   :  { %v253_v3 = vpop.xlane.xlu2 %252 }
 0x133   :  { %v277_v9 = vperm.slane %v253_v3, %v272_v2  ;;  %v262_v12 = vpop.xlane.xlu1 %261 }
 0x134   :  { %v280_v18 = vperm.slane %v262_v12, %v272_v2 }
 0x135   :  { %v288_v17 = vsel %vm287_vm4, %v277_v9, %v286_v14 }
 0x13a   :  { %v256_v13 = vpop.xlane.xlu2 %255 }
 0x13b   :  { %v278_v15 = vperm.slane %v256_v13, %v272_v2 }
 0x13d   :  { %v290_v19 = vsel %vm289_vm5, %v278_v15, %v288_v17 }
 0x13e   :  { %v292_v20 = vsel %vm291_vm6, %v279_v16, %v290_v19 }
 0x13f   :  { %v294_v21 = vsel %vm293_vm7, %v280_v18, %v292_v20 }
 0x140   :  { %296 = vxpose.xlu2.b32.start.end [1/1] (short) (narrow) %v294_v21, 8 }
 0x1d9   :  { %v312_v23 = vpop.trf.xlu2 }
 0x1da   :  { %v329_v24 = vsel %vm328_vm8, %v312_v23, 0.0 }
 0x1db   :  { %v331_v25 = vadd.f32 %v330_v22, %v329_v24 }
 0x1dd   :  { %332 = vmax.xlane.f32.xlu0 %v331_v25 }
 0x250   :  { %v333_v26 = vpop.xlane.xlu0 %332 }
 0x251   :  { %v334_v27 = vsub.f32 %v331_v25, %v333_v26 }
 0x253   :  { %v335_v28 = vmul.f32 1.442695, %v334_v27 }
 0x255   :  { %408 = vpow2.f32 %v335_v28 }
 0x25b   :  { %v409_v29 = vpop.eup %408 }
 0x25c   :  { %337 = vadd.xlane.f32.xlu1 %v409_v29 }
 0x2cf   :  { %v338_v30 = vpop.xlane.xlu1 %337 }
 0x2d0   :  { %410 = vrcp.f32 %v338_v30 }
 0x2d6   :  { %v411_v31 = vpop.eup %410 }
 0x2d7   :  { %v340_v32 = vmul.f32 %v411_v31, %v338_v30 }
 0x2d9   :  { %v341_v33 = vsub.f32 2.0, %v340_v32 }
 0x2db   :  { %v342_v34 = vmul.f32 %v411_v31, %v341_v33 }
 0x2dd   :  { %v343_v35 = vmul.f32 %v409_v29, %v342_v34 }
 0x2df   :  { %344 = vst [vmem:[#allocation11] sm:$0xff] %v343_v35 }
 0x2e0   :  { %355 = dma.vmem_to_hbm [thread:$0]  %s351_s6, 128, %s353_s29, [#allocation4]  }
 0x2e1   :  { %562 = dma.done.wait [#allocation4], 128  }
 0x2e2   :  { %563 = vsyncadd [#allocation4], 4294967168 }
 0x2e3   :  { %360 = vsyncpa [#allocation3], 1 }
 0x2e4   :  { %361 = vsyncpa [#allocation6], 1 }
 0x2e5   :  { %362 = vsyncpa [#allocation9], 1 }
 0x2e6   :  { %363 = vsyncpa [#allocation4], 1 }

</bundles_post_ra>
